<compile_context>
chip_gen: v6e
topology: v6e:2x2x1
jax: 0.10.0
libtpu: 0.0.40
codegen_flags: <defaults>
</compile_context>

<pallas_src>
import functools

import jax
import jax.numpy as jnp
from jax.experimental import pallas as pl
from jax.experimental.pallas import tpu as pltpu


def _kv_memory_kernel(x_ref, wk_ref, wv_ref, out_ref, m_sc, l_sc, acc_sc, *,
                      emb_dim, mxu_dtype, approx_recip, concat_output):
    """One (batch-tile, memory-tile) grid step of the fused KV-memory forward.

    The trailing grid axis streams memory-slot tiles; m/l/acc scratch implement
    an online softmax (mathematically identical to the PyTorch exp/sum/div).
    Garbage rows of a ragged last batch tile may produce inf/NaN here; they are
    row-local and dropped on the partial output writeback (not a bug).
    """
    j = pl.program_id(1)

    @pl.when(j == 0)
    def _init():
        m_sc[...] = jnp.full_like(m_sc, -jnp.inf)
        l_sc[...] = jnp.zeros_like(l_sc)
        acc_sc[...] = jnp.zeros_like(acc_sc)

    x = x_ref[...]
    # Optionally feed the MXU bf16 operands (f32 operands take a multi-pass MXU
    # path, ~3x the cycles); accumulation stays f32 via preferred_element_type.
    x_mm = x if (mxu_dtype is None or x.dtype == mxu_dtype) else x.astype(mxu_dtype)

    # Key projection for this memory tile: (tb, E) @ (E, tm) -> (tb, tm).  [MXU]
    scores = jnp.dot(x_mm, wk_ref[...], preferred_element_type=jnp.float32)

    # Online, numerically-stable softmax update over memory slots.
    m_prev = m_sc[...]
    m_new = jnp.maximum(m_prev, jnp.max(scores, axis=-1, keepdims=True))   # [XLU]
    alpha = jnp.exp(m_prev - m_new)                                        # [EUP]
    p = jnp.exp(scores - m_new)                                            # [EUP]
    l_sc[...] = alpha * l_sc[...] + jnp.sum(p, axis=-1, keepdims=True)     # [XLU+VPU]
    # Value read-out for this memory tile: (tb, tm) @ (tm, C) -> (tb, C).   [MXU]
    acc_sc[...] = alpha * acc_sc[...] + jnp.dot(
        p.astype(wv_ref.dtype), wv_ref[...], preferred_element_type=jnp.float32)
    m_sc[...] = m_new

    @pl.when(j == pl.num_programs(1) - 1)
    def _finalize():
        # Exact reciprocal on the f32 path; approx (EUP) reciprocal when the
        # output is low precision anyway.
        inv_l = pl.reciprocal(l_sc[...], approx=approx_recip)
        ctx = acc_sc[...] * inv_l
        if concat_output:
            # Fused concat: out = [x | ctx] written directly into the output slab.
            out_ref[:, :emb_dim] = x.astype(out_ref.dtype)
            out_ref[:, emb_dim:] = ctx.astype(out_ref.dtype)
        else:
            out_ref[...] = ctx.astype(out_ref.dtype)


def _round_up(x, m):
    return ((x + m - 1) // m) * m


def _choose_tb(B, cap):
    """Batch tile: >= 2 grid steps when B permits (megacore + DMA/compute overlap)."""
    if B <= 16:
        return B                      # full-extent block dim is always legal
    cap = max(8, (cap // 8) * 8)      # keep the sublane dim a multiple of 8
    return max(8, min(cap, _round_up(pl.cdiv(B, 2), 16)))


def _choose_tm(M, cap):
    """Memory-slot tile: largest multiple of 128 that divides M and is <= cap."""
    if M <= cap or M % 128 != 0:
        return M
    cap = max(128, (cap // 128) * 128)
    for tm in range(cap, 127, -128):
        if M % tm == 0:
            return tm
    return M                          # no nice divisor -> single full-M tile


def kv_memory_forward(input_embedding, wk_t, wv_t, inv_temp=None, *,
                      tile_b=128, tile_m=2048, mxu_dtype=None,
                      concat_output=True):
    """Pallas implementation of KeyValueMemory.forward (use_memory=True, fwd=True).

    Args:
      input_embedding: (B, emb_dim).
      wk_t: (emb_dim, mem_size)           -- Wk transposed (nn.Linear weight is (out, in)).
      wv_t: (mem_size, mem_context_size)  -- Wv transposed.
      inv_temp: optional python float; folded into wk_t (static parameter).
      tile_b: batch-tile cap. Default 128 keeps (tb, tm) f32 temporaries small
        enough for v7x's 64 MiB per-TC VMEM.
      tile_m: memory-slot tile cap for the streamed online-softmax axis.
      mxu_dtype: optional matmul operand dtype (e.g. jnp.bfloat16) when the
        caller passes f32; accumulation stays f32.  Weights are cast once here
        (note: folding inv_temp then casting re-quantizes the weights slightly).
      concat_output: True (module semantics) -> (B, emb_dim + mem_context_size);
        False -> only the (B, mem_context_size) memory context (skips re-writing
        x, which is already in HBM).
    """
    x = input_embedding
    B, E = x.shape
    E2, M = wk_t.shape
    M2, C = wv_t.shape
    assert E == E2 and M == M2, "weight shapes inconsistent with input"

    # Fold the (static) inverse temperature into the key weights once, in f32.
    if inv_temp is not None:
        wk_t = (wk_t.astype(jnp.float32) * jnp.float32(inv_temp)).astype(wk_t.dtype)
    if mxu_dtype is not None:
        wk_t = wk_t.astype(mxu_dtype)
        wv_t = wv_t.astype(mxu_dtype)

    tb = _choose_tb(B, tile_b)
    tm = _choose_tm(M, tile_m)
    n_b = pl.cdiv(B, tb)   # ragged last batch tile: rows are independent, OOB rows dropped
    n_m = pl.cdiv(M, tm)   # tm divides M (or equals it), so no ragged memory tile

    out_dtype = x.dtype
    out_cols = (E + C) if concat_output else C
    approx_recip = jnp.dtype(out_dtype) != jnp.dtype(jnp.float32)

    kernel = functools.partial(
        _kv_memory_kernel, emb_dim=E, mxu_dtype=mxu_dtype,
        approx_recip=approx_recip, concat_output=concat_output)

    isz = lambda d: jnp.dtype(d).itemsize

    def _vmem_bytes(w_bufs):
        return (2 * tb * E * isz(x.dtype)                       # x double-buffer
                + w_bufs * (E * tm + tm * C) * isz(wk_t.dtype)  # weights
                + 2 * tb * out_cols * isz(out_dtype)            # out double-buffer
                + tb * (C + 2) * 4                              # f32 scratch (acc, m, l)
                + 3 * tb * tm * 4)                              # scores/exp temporaries

    def _build(single_buffer_weights):
        if single_buffer_weights:
            # Constant weight index map -> second pipeline buffer is pure waste.
            wk_spec = pl.BlockSpec((E, tm), lambda i, j: (0, j),
                                   pipeline_mode=pl.Buffered(buffer_count=1))
            wv_spec = pl.BlockSpec((tm, C), lambda i, j: (j, 0),
                                   pipeline_mode=pl.Buffered(buffer_count=1))
            w_bufs = 1
        else:
            wk_spec = pl.BlockSpec((E, tm), lambda i, j: (0, j))
            wv_spec = pl.BlockSpec((tm, C), lambda i, j: (j, 0))
            w_bufs = 2
        vmem_limit = int(min(max(_vmem_bytes(w_bufs) * 5 // 4 + (2 << 20), 16 << 20),
                             64 << 20))
        return pl.pallas_call(
            kernel,
            out_shape=jax.ShapeDtypeStruct((B, out_cols), out_dtype),
            grid=(n_b, n_m),
            in_specs=[
                pl.BlockSpec((tb, E), lambda i, j: (i, 0)),   # x: tiled over batch only
                wk_spec,                                      # Wk: streamed over memory tiles
                wv_spec,                                      # Wv: streamed over memory tiles
            ],
            out_specs=pl.BlockSpec((tb, out_cols), lambda i, j: (i, 0)),
            scratch_shapes=[
                pltpu.VMEM((tb, 1), jnp.float32),   # running max
                pltpu.VMEM((tb, 1), jnp.float32),   # running sum
                pltpu.VMEM((tb, C), jnp.float32),   # context accumulator
            ],
            compiler_params=pltpu.CompilerParams(
                dimension_semantics=("parallel", "arbitrary"),
                vmem_limit_bytes=vmem_limit),
        )

    if n_m == 1:
        try:
            return _build(single_buffer_weights=True)(x, wk_t, wv_t)
        except Exception:
            pass   # fall back to default double-buffered weights
    return _build(single_buffer_weights=False)(x, wk_t, wv_t)


def _reference_forward(x, wk_t, wv_t, inv_temp=None, concat_output=True):
    """Pure-JAX mirror of the PyTorch access_memory + concat (f32)."""
    x32 = x.astype(jnp.float32)
    scores = x32 @ wk_t.astype(jnp.float32)
    if inv_temp is not None:
        scores = inv_temp * scores
    k = jnp.exp(scores)
    alpha = jnp.sum(k, axis=-1, keepdims=True)
    ctx = (k / alpha) @ wv_t.astype(jnp.float32)
    if concat_output:
        return jnp.concatenate([x32, ctx], axis=-1)
    return ctx


if __name__ == "__main__":
    emb_dim = 128
    mem_size = 256
    mem_context_size = 128
    inv_temp = 0.5          # exercise the inv_temp branch

    key = jax.random.PRNGKey(0)
    k_x, k_x2, k_wk, k_wv = jax.random.split(key, 4)

    # Deterministic nn.Linear-style init: U(-1/sqrt(in_features), 1/sqrt(in_features)),
    # stored directly in the transposed (in, out) layout used by the kernel.
    bound_k = 1.0 / (emb_dim ** 0.5)
    bound_v = 1.0 / (mem_size ** 0.5)
    wk_t = jax.random.uniform(k_wk, (emb_dim, mem_size),
                              minval=-bound_k, maxval=bound_k, dtype=jnp.float32)
    wv_t = jax.random.uniform(k_wv, (mem_size, mem_context_size),
                              minval=-bound_v, maxval=bound_v, dtype=jnp.float32)

    # --- (1) f32, single memory tile, exact reciprocal ------------------------
    B = 8
    x = jax.random.normal(k_x, (B, emb_dim), dtype=jnp.float32)
    ref = _reference_forward(x, wk_t, wv_t, inv_temp=inv_temp)
    out = jax.block_until_ready(kv_memory_forward(x, wk_t, wv_t, inv_temp=inv_temp))
    assert out.shape == (B, emb_dim + mem_context_size), out.shape
    assert jnp.allclose(out, ref, atol=2e-4, rtol=2e-4), "f32 mismatch vs reference"

    # --- (2) multi-tile batch (ragged last tile) + memory-axis online softmax --
    B2 = 48
    x2 = jax.random.normal(k_x2, (B2, emb_dim), dtype=jnp.float32)
    ref2 = _reference_forward(x2, wk_t, wv_t, inv_temp=inv_temp)
    out2 = jax.block_until_ready(
        kv_memory_forward(x2, wk_t, wv_t, inv_temp=inv_temp, tile_b=32, tile_m=128))
    assert out2.shape == (B2, emb_dim + mem_context_size), out2.shape
    assert jnp.allclose(out2, ref2, atol=2e-4, rtol=2e-4), "tiled f32 mismatch"

    # --- (3) bf16 end-to-end (native MXU dtype) --------------------------------
    out_bf16 = jax.block_until_ready(
        kv_memory_forward(x.astype(jnp.bfloat16), wk_t.astype(jnp.bfloat16),
                          wv_t.astype(jnp.bfloat16), inv_temp=inv_temp))
    assert out_bf16.shape == (B, emb_dim + mem_context_size), out_bf16.shape
    assert jnp.allclose(out_bf16.astype(jnp.float32), ref, atol=1e-1, rtol=1e-1), \
        "bf16 mismatch vs reference"

    # --- (4) f32 inputs with bf16 MXU operands (v5e-friendly path) --------------
    out_mix = jax.block_until_ready(
        kv_memory_forward(x, wk_t, wv_t, inv_temp=inv_temp, mxu_dtype=jnp.bfloat16))
    assert out_mix.shape == (B, emb_dim + mem_context_size), out_mix.shape
    assert jnp.allclose(out_mix, ref, atol=5e-2, rtol=5e-2), "bf16-MXU mismatch"

    # --- (5) context-only output (skip the redundant x writeback) ---------------
    ctx_only = jax.block_until_ready(
        kv_memory_forward(x, wk_t, wv_t, inv_temp=inv_temp, concat_output=False))
    assert ctx_only.shape == (B, mem_context_size), ctx_only.shape
    assert jnp.allclose(ctx_only, ref[:, emb_dim:], atol=2e-4, rtol=2e-4), \
        "ctx-only mismatch"

    print("KERNEL_OK")
</pallas_src>

<mosaic_0001>
module attributes {stable_mosaic.version = 11 : i64} {
  func.func @_kv_memory_kernel(%arg0: i32, %arg1: i32, %arg2: memref<8x128xf32, #tpu.memory_space<vmem>>, %arg3: memref<128x256xf32, #tpu.memory_space<vmem>>, %arg4: memref<256x128xf32, #tpu.memory_space<vmem>>, %arg5: memref<8x256xf32, #tpu.memory_space<vmem>>, %arg6: memref<8x1xf32, #tpu.memory_space<vmem>>, %arg7: memref<8x1xf32, #tpu.memory_space<vmem>>, %arg8: memref<8x128xf32, #tpu.memory_space<vmem>>) attributes {dimension_semantics = [#tpu.dimension_semantics<parallel>, #tpu.dimension_semantics<arbitrary>], iteration_bounds = array<i64: 1, 1>, scalar_prefetch = 0 : i64, scratch_operands = 3 : i64, tpu.core_type = #tpu.core_type<tc>, window_params = [{transform_indices = @transform_0, window_bounds = array<i64: 8, 128>}, {pipeline_mode = #tpu.pipeline_mode<synchronous>, transform_indices = @transform_1, window_bounds = array<i64: 128, 256>}, {pipeline_mode = #tpu.pipeline_mode<synchronous>, transform_indices = @transform_2, window_bounds = array<i64: 256, 128>}, {transform_indices = @transform_3, window_bounds = array<i64: 8, 256>}]} {
    %c0_i32 = arith.constant 0 : i32
    %0 = arith.cmpi eq, %arg1, %c0_i32 : i32
    %1 = arith.extui %0 : i1 to i32
    %c0_i32_0 = arith.constant 0 : i32
    %2 = arith.cmpi ne, %1, %c0_i32_0 : i32
    scf.if %2 {
      %cst_23 = arith.constant 0xFF800000 : f32
      %32 = vector.broadcast %cst_23 : f32 to vector<8x1xf32>
      %c0_24 = arith.constant 0 : index
      %c0_25 = arith.constant 0 : index
      %33 = vector.load %arg6[%c0_24, %c0_25] : memref<8x1xf32, #tpu.memory_space<vmem>>, vector<8x1xf32>
      tpu.vector_store %arg6[%c0_24, %c0_25], %32 {strides = array<i32>} : memref<8x1xf32, #tpu.memory_space<vmem>>, vector<8x1xf32>,
      %cst_26 = arith.constant 0.000000e+00 : f32
      %34 = vector.broadcast %cst_26 : f32 to vector<8x1xf32>
      %c0_27 = arith.constant 0 : index
      %c0_28 = arith.constant 0 : index
      %35 = vector.load %arg7[%c0_27, %c0_28] : memref<8x1xf32, #tpu.memory_space<vmem>>, vector<8x1xf32>
      tpu.vector_store %arg7[%c0_27, %c0_28], %34 {strides = array<i32>} : memref<8x1xf32, #tpu.memory_space<vmem>>, vector<8x1xf32>,
      %cst_29 = arith.constant 0.000000e+00 : f32
      %36 = vector.broadcast %cst_29 : f32 to vector<8x128xf32>
      %c0_30 = arith.constant 0 : index
      %c0_31 = arith.constant 0 : index
      %37 = vector.load %arg8[%c0_30, %c0_31] : memref<8x128xf32, #tpu.memory_space<vmem>>, vector<8x128xf32>
      tpu.vector_store %arg8[%c0_30, %c0_31], %36 {strides = array<i32>} : memref<8x128xf32, #tpu.memory_space<vmem>>, vector<8x128xf32>,
    } else {
    }
    %c0 = arith.constant 0 : index
    %c0_1 = arith.constant 0 : index
    %3 = vector.load %arg2[%c0, %c0_1] : memref<8x128xf32, #tpu.memory_space<vmem>>, vector<8x128xf32>
    %c0_2 = arith.constant 0 : index
    %c0_3 = arith.constant 0 : index
    %4 = vector.load %arg3[%c0_2, %c0_3] : memref<128x256xf32, #tpu.memory_space<vmem>>, vector<128x256xf32>
    %cst = arith.constant dense<0.000000e+00> : vector<8x256xf32>
    %5 = tpu.matmul %3, %4, %cst {dimension_numbers = #tpu.dot_dimension_numbers<[1], [0], [0], [1], [0, 0, 1, 1], [], []>} : vector<8x128xf32>, vector<128x256xf32>, vector<8x256xf32> -> vector<8x256xf32>
    %c0_4 = arith.constant 0 : index
    %c0_5 = arith.constant 0 : index
    %6 = vector.load %arg6[%c0_4, %c0_5] : memref<8x1xf32, #tpu.memory_space<vmem>>, vector<8x1xf32>
    %cst_6 = arith.constant dense<0xFF800000> : vector<8xf32>
    %7 = vector.multi_reduction <maximumf>, %5, %cst_6 [1] : vector<8x256xf32> to vector<8xf32>
    %8 = vector.shape_cast %7 : vector<8xf32> to vector<8x1xf32>
    %9 = arith.maximumf %6, %8 : vector<8x1xf32>
    %10 = arith.subf %6, %9 : vector<8x1xf32>
    %11 = math.exp %10 : vector<8x1xf32>
    %12 = vector.broadcast %9 : vector<8x1xf32> to vector<8x256xf32>
    %13 = arith.subf %5, %12 : vector<8x256xf32>
    %14 = math.exp %13 : vector<8x256xf32>
    %c0_7 = arith.constant 0 : index
    %c0_8 = arith.constant 0 : index
    %15 = vector.load %arg7[%c0_7, %c0_8] : memref<8x1xf32, #tpu.memory_space<vmem>>, vector<8x1xf32>
    %16 = arith.mulf %11, %15 : vector<8x1xf32>
    %cst_9 = arith.constant dense<0.000000e+00> : vector<8xf32>
    %17 = vector.multi_reduction <add>, %14, %cst_9 [1] : vector<8x256xf32> to vector<8xf32>
    %18 = vector.shape_cast %17 : vector<8xf32> to vector<8x1xf32>
    %19 = arith.addf %16, %18 : vector<8x1xf32>
    %c0_10 = arith.constant 0 : index
    %c0_11 = arith.constant 0 : index
    %20 = vector.load %arg7[%c0_10, %c0_11] : memref<8x1xf32, #tpu.memory_space<vmem>>, vector<8x1xf32>
    tpu.vector_store %arg7[%c0_10, %c0_11], %19 {strides = array<i32>} : memref<8x1xf32, #tpu.memory_space<vmem>>, vector<8x1xf32>,
    %c0_12 = arith.constant 0 : index
    %c0_13 = arith.constant 0 : index
    %21 = vector.load %arg8[%c0_12, %c0_13] : memref<8x128xf32, #tpu.memory_space<vmem>>, vector<8x128xf32>
    %22 = vector.broadcast %11 : vector<8x1xf32> to vector<8x128xf32>
    %23 = arith.mulf %22, %21 : vector<8x128xf32>
    %c0_14 = arith.constant 0 : index
    %c0_15 = arith.constant 0 : index
    %24 = vector.load %arg4[%c0_14, %c0_15] : memref<256x128xf32, #tpu.memory_space<vmem>>, vector<256x128xf32>
    %cst_16 = arith.constant dense<0.000000e+00> : vector<8x128xf32>
    %25 = tpu.matmul %14, %24, %cst_16 {dimension_numbers = #tpu.dot_dimension_numbers<[1], [0], [0], [1], [0, 0, 1, 1], [], []>} : vector<8x256xf32>, vector<256x128xf32>, vector<8x128xf32> -> vector<8x128xf32>
    %26 = arith.addf %23, %25 : vector<8x128xf32>
    %c0_17 = arith.constant 0 : index
    %c0_18 = arith.constant 0 : index
    %27 = vector.load %arg8[%c0_17, %c0_18] : memref<8x128xf32, #tpu.memory_space<vmem>>, vector<8x128xf32>
    tpu.vector_store %arg8[%c0_17, %c0_18], %26 {strides = array<i32>} : memref<8x128xf32, #tpu.memory_space<vmem>>, vector<8x128xf32>,
    %c0_19 = arith.constant 0 : index
    %c0_20 = arith.constant 0 : index
    %28 = vector.load %arg6[%c0_19, %c0_20] : memref<8x1xf32, #tpu.memory_space<vmem>>, vector<8x1xf32>
    tpu.vector_store %arg6[%c0_19, %c0_20], %9 {strides = array<i32>} : memref<8x1xf32, #tpu.memory_space<vmem>>, vector<8x1xf32>,
    %c0_i32_21 = arith.constant 0 : i32
    %29 = arith.cmpi eq, %arg1, %c0_i32_21 : i32
    %30 = arith.extui %29 : i1 to i32
    %c0_i32_22 = arith.constant 0 : i32
    %31 = arith.cmpi ne, %30, %c0_i32_22 : i32
    scf.if %31 {
      %c0_23 = arith.constant 0 : index
      %c0_24 = arith.constant 0 : index
      %32 = vector.load %arg7[%c0_23, %c0_24] : memref<8x1xf32, #tpu.memory_space<vmem>>, vector<8x1xf32>
      %33 = tpu.reciprocal %32 : vector<8x1xf32> -> vector<8x1xf32>
      %c0_25 = arith.constant 0 : index
      %c0_26 = arith.constant 0 : index
      %34 = vector.load %arg8[%c0_25, %c0_26] : memref<8x128xf32, #tpu.memory_space<vmem>>, vector<8x128xf32>
      %35 = vector.broadcast %33 : vector<8x1xf32> to vector<8x128xf32>
      %36 = arith.mulf %34, %35 : vector<8x128xf32>
      %c0_27 = arith.constant 0 : index
      %c0_28 = arith.constant 0 : index
      %37 = vector.load %arg5[%c0_27, %c0_28] : memref<8x256xf32, #tpu.memory_space<vmem>>, vector<8x128xf32>
      tpu.vector_store %arg5[%c0_27, %c0_28], %3 {strides = array<i32>} : memref<8x256xf32, #tpu.memory_space<vmem>>, vector<8x128xf32>,
      %c0_29 = arith.constant 0 : index
      %c128 = arith.constant 128 : index
      %38 = vector.load %arg5[%c0_29, %c128] : memref<8x256xf32, #tpu.memory_space<vmem>>, vector<8x128xf32>
      tpu.vector_store %arg5[%c0_29, %c128], %36 {strides = array<i32>} : memref<8x256xf32, #tpu.memory_space<vmem>>, vector<8x128xf32>,
    } else {
    }
    return
  }
  func.func @transform_0(%arg0: i32, %arg1: i32) -> (i32, i32) {
    %c0_i32 = arith.constant 0 : i32
    %c0_i32_0 = arith.constant 0 : i32
    return %arg0, %c0_i32 : i32, i32
  }
  func.func @transform_1(%arg0: i32, %arg1: i32) -> (i32, i32) {
    %c0_i32 = arith.constant 0 : i32
    %c0_i32_0 = arith.constant 0 : i32
    return %c0_i32, %arg1 : i32, i32
  }
  func.func @transform_2(%arg0: i32, %arg1: i32) -> (i32, i32) {
    %c0_i32 = arith.constant 0 : i32
    %c0_i32_0 = arith.constant 0 : i32
    return %arg1, %c0_i32 : i32, i32
  }
  func.func @transform_3(%arg0: i32, %arg1: i32) -> (i32, i32) {
    %c0_i32 = arith.constant 0 : i32
    %c0_i32_0 = arith.constant 0 : i32
    return %arg0, %c0_i32 : i32, i32
  }
}

module attributes {stable_mosaic.version = 11 : i64} {
  func.func @_kv_memory_kernel(%arg0: i32, %arg1: i32, %arg2: memref<8x128xf32, #tpu.memory_space<vmem>>, %arg3: memref<128x256xf32, #tpu.memory_space<vmem>>, %arg4: memref<256x128xf32, #tpu.memory_space<vmem>>, %arg5: memref<8x256xf32, #tpu.memory_space<vmem>>, %arg6: memref<8x1xf32, #tpu.memory_space<vmem>>, %arg7: memref<8x1xf32, #tpu.memory_space<vmem>>, %arg8: memref<8x128xf32, #tpu.memory_space<vmem>>) attributes {dimension_semantics = [#tpu.dimension_semantics<parallel>, #tpu.dimension_semantics<arbitrary>], iteration_bounds = array<i64: 1, 1>, scalar_prefetch = 0 : i64, scratch_operands = 3 : i64, tpu.core_type = #tpu.core_type<tc>, window_params = [{transform_indices = @transform_0, window_bounds = array<i64: 8, 128>}, {transform_indices = @transform_1, window_bounds = array<i64: 128, 256>}, {transform_indices = @transform_2, window_bounds = array<i64: 256, 128>}, {transform_indices = @transform_3, window_bounds = array<i64: 8, 256>}]} {
    %c0_i32 = arith.constant 0 : i32
    %0 = arith.cmpi eq, %arg1, %c0_i32 : i32
    %1 = arith.extui %0 : i1 to i32
    %c0_i32_0 = arith.constant 0 : i32
    %2 = arith.cmpi ne, %1, %c0_i32_0 : i32
    scf.if %2 {
      %cst_23 = arith.constant 0xFF800000 : f32
      %32 = vector.broadcast %cst_23 : f32 to vector<8x1xf32>
      %c0_24 = arith.constant 0 : index
      %c0_25 = arith.constant 0 : index
      %33 = vector.load %arg6[%c0_24, %c0_25] : memref<8x1xf32, #tpu.memory_space<vmem>>, vector<8x1xf32>
      tpu.vector_store %arg6[%c0_24, %c0_25], %32 {strides = array<i32>} : memref<8x1xf32, #tpu.memory_space<vmem>>, vector<8x1xf32>,
      %cst_26 = arith.constant 0.000000e+00 : f32
      %34 = vector.broadcast %cst_26 : f32 to vector<8x1xf32>
      %c0_27 = arith.constant 0 : index
      %c0_28 = arith.constant 0 : index
      %35 = vector.load %arg7[%c0_27, %c0_28] : memref<8x1xf32, #tpu.memory_space<vmem>>, vector<8x1xf32>
      tpu.vector_store %arg7[%c0_27, %c0_28], %34 {strides = array<i32>} : memref<8x1xf32, #tpu.memory_space<vmem>>, vector<8x1xf32>,
      %cst_29 = arith.constant 0.000000e+00 : f32
      %36 = vector.broadcast %cst_29 : f32 to vector<8x128xf32>
      %c0_30 = arith.constant 0 : index
      %c0_31 = arith.constant 0 : index
      %37 = vector.load %arg8[%c0_30, %c0_31] : memref<8x128xf32, #tpu.memory_space<vmem>>, vector<8x128xf32>
      tpu.vector_store %arg8[%c0_30, %c0_31], %36 {strides = array<i32>} : memref<8x128xf32, #tpu.memory_space<vmem>>, vector<8x128xf32>,
    } else {
    }
    %c0 = arith.constant 0 : index
    %c0_1 = arith.constant 0 : index
    %3 = vector.load %arg2[%c0, %c0_1] : memref<8x128xf32, #tpu.memory_space<vmem>>, vector<8x128xf32>
    %c0_2 = arith.constant 0 : index
    %c0_3 = arith.constant 0 : index
    %4 = vector.load %arg3[%c0_2, %c0_3] : memref<128x256xf32, #tpu.memory_space<vmem>>, vector<128x256xf32>
    %cst = arith.constant dense<0.000000e+00> : vector<8x256xf32>
    %5 = tpu.matmul %3, %4, %cst {dimension_numbers = #tpu.dot_dimension_numbers<[1], [0], [0], [1], [0, 0, 1, 1], [], []>} : vector<8x128xf32>, vector<128x256xf32>, vector<8x256xf32> -> vector<8x256xf32>
    %c0_4 = arith.constant 0 : index
    %c0_5 = arith.constant 0 : index
    %6 = vector.load %arg6[%c0_4, %c0_5] : memref<8x1xf32, #tpu.memory_space<vmem>>, vector<8x1xf32>
    %cst_6 = arith.constant dense<0xFF800000> : vector<8xf32>
    %7 = vector.multi_reduction <maximumf>, %5, %cst_6 [1] : vector<8x256xf32> to vector<8xf32>
    %8 = vector.shape_cast %7 : vector<8xf32> to vector<8x1xf32>
    %9 = arith.maximumf %6, %8 : vector<8x1xf32>
    %10 = arith.subf %6, %9 : vector<8x1xf32>
    %11 = math.exp %10 : vector<8x1xf32>
    %12 = vector.broadcast %9 : vector<8x1xf32> to vector<8x256xf32>
    %13 = arith.subf %5, %12 : vector<8x256xf32>
    %14 = math.exp %13 : vector<8x256xf32>
    %c0_7 = arith.constant 0 : index
    %c0_8 = arith.constant 0 : index
    %15 = vector.load %arg7[%c0_7, %c0_8] : memref<8x1xf32, #tpu.memory_space<vmem>>, vector<8x1xf32>
    %16 = arith.mulf %11, %15 : vector<8x1xf32>
    %cst_9 = arith.constant dense<0.000000e+00> : vector<8xf32>
    %17 = vector.multi_reduction <add>, %14, %cst_9 [1] : vector<8x256xf32> to vector<8xf32>
    %18 = vector.shape_cast %17 : vector<8xf32> to vector<8x1xf32>
    %19 = arith.addf %16, %18 : vector<8x1xf32>
    %c0_10 = arith.constant 0 : index
    %c0_11 = arith.constant 0 : index
    %20 = vector.load %arg7[%c0_10, %c0_11] : memref<8x1xf32, #tpu.memory_space<vmem>>, vector<8x1xf32>
    tpu.vector_store %arg7[%c0_10, %c0_11], %19 {strides = array<i32>} : memref<8x1xf32, #tpu.memory_space<vmem>>, vector<8x1xf32>,
    %c0_12 = arith.constant 0 : index
    %c0_13 = arith.constant 0 : index
    %21 = vector.load %arg8[%c0_12, %c0_13] : memref<8x128xf32, #tpu.memory_space<vmem>>, vector<8x128xf32>
    %22 = vector.broadcast %11 : vector<8x1xf32> to vector<8x128xf32>
    %23 = arith.mulf %22, %21 : vector<8x128xf32>
    %c0_14 = arith.constant 0 : index
    %c0_15 = arith.constant 0 : index
    %24 = vector.load %arg4[%c0_14, %c0_15] : memref<256x128xf32, #tpu.memory_space<vmem>>, vector<256x128xf32>
    %cst_16 = arith.constant dense<0.000000e+00> : vector<8x128xf32>
    %25 = tpu.matmul %14, %24, %cst_16 {dimension_numbers = #tpu.dot_dimension_numbers<[1], [0], [0], [1], [0, 0, 1, 1], [], []>} : vector<8x256xf32>, vector<256x128xf32>, vector<8x128xf32> -> vector<8x128xf32>
    %26 = arith.addf %23, %25 : vector<8x128xf32>
    %c0_17 = arith.constant 0 : index
    %c0_18 = arith.constant 0 : index
    %27 = vector.load %arg8[%c0_17, %c0_18] : memref<8x128xf32, #tpu.memory_space<vmem>>, vector<8x128xf32>
    tpu.vector_store %arg8[%c0_17, %c0_18], %26 {strides = array<i32>} : memref<8x128xf32, #tpu.memory_space<vmem>>, vector<8x128xf32>,
    %c0_19 = arith.constant 0 : index
    %c0_20 = arith.constant 0 : index
    %28 = vector.load %arg6[%c0_19, %c0_20] : memref<8x1xf32, #tpu.memory_space<vmem>>, vector<8x1xf32>
    tpu.vector_store %arg6[%c0_19, %c0_20], %9 {strides = array<i32>} : memref<8x1xf32, #tpu.memory_space<vmem>>, vector<8x1xf32>,
    %c0_i32_21 = arith.constant 0 : i32
    %29 = arith.cmpi eq, %arg1, %c0_i32_21 : i32
    %30 = arith.extui %29 : i1 to i32
    %c0_i32_22 = arith.constant 0 : i32
    %31 = arith.cmpi ne, %30, %c0_i32_22 : i32
    scf.if %31 {
      %c0_23 = arith.constant 0 : index
      %c0_24 = arith.constant 0 : index
      %32 = vector.load %arg7[%c0_23, %c0_24] : memref<8x1xf32, #tpu.memory_space<vmem>>, vector<8x1xf32>
      %33 = tpu.reciprocal %32 : vector<8x1xf32> -> vector<8x1xf32>
      %c0_25 = arith.constant 0 : index
      %c0_26 = arith.constant 0 : index
      %34 = vector.load %arg8[%c0_25, %c0_26] : memref<8x128xf32, #tpu.memory_space<vmem>>, vector<8x128xf32>
      %35 = vector.broadcast %33 : vector<8x1xf32> to vector<8x128xf32>
      %36 = arith.mulf %34, %35 : vector<8x128xf32>
      %c0_27 = arith.constant 0 : index
      %c0_28 = arith.constant 0 : index
      %37 = vector.load %arg5[%c0_27, %c0_28] : memref<8x256xf32, #tpu.memory_space<vmem>>, vector<8x128xf32>
      tpu.vector_store %arg5[%c0_27, %c0_28], %3 {strides = array<i32>} : memref<8x256xf32, #tpu.memory_space<vmem>>, vector<8x128xf32>,
      %c0_29 = arith.constant 0 : index
      %c128 = arith.constant 128 : index
      %38 = vector.load %arg5[%c0_29, %c128] : memref<8x256xf32, #tpu.memory_space<vmem>>, vector<8x128xf32>
      tpu.vector_store %arg5[%c0_29, %c128], %36 {strides = array<i32>} : memref<8x256xf32, #tpu.memory_space<vmem>>, vector<8x128xf32>,
    } else {
    }
    return
  }
  func.func @transform_0(%arg0: i32, %arg1: i32) -> (i32, i32) {
    %c0_i32 = arith.constant 0 : i32
    %c0_i32_0 = arith.constant 0 : i32
    return %arg0, %c0_i32 : i32, i32
  }
  func.func @transform_1(%arg0: i32, %arg1: i32) -> (i32, i32) {
    %c0_i32 = arith.constant 0 : i32
    %c0_i32_0 = arith.constant 0 : i32
    return %c0_i32, %arg1 : i32, i32
  }
  func.func @transform_2(%arg0: i32, %arg1: i32) -> (i32, i32) {
    %c0_i32 = arith.constant 0 : i32
    %c0_i32_0 = arith.constant 0 : i32
    return %arg1, %c0_i32 : i32, i32
  }
  func.func @transform_3(%arg0: i32, %arg1: i32) -> (i32, i32) {
    %c0_i32 = arith.constant 0 : i32
    %c0_i32_0 = arith.constant 0 : i32
    return %arg0, %c0_i32 : i32, i32
  }
}

</mosaic_0001>

<bundles_post_ra>
// kernel: tpu_custom_call.1
= control target key start
LH: loop header
LB: loop body
LE: loop exit
PB: predicated region body
PF: predicated region fallthrough
CT: control target
= control target key end

     0   :  { %8 = vsyncpa [#allocation6], 0  ;;  %s532_s0 = inlined_call_operand.hbm [shape: f32[8,128], index: 0, kind: input, shape index: {}]   ;;  %s533_s1 = inlined_call_operand.hbm [shape: f32[128,256], index: 1, kind: input, shape index: {}]   ;;  %s534_s2 = inlined_call_operand.hbm [shape: f32[256,128], index: 2, kind: input, shape index: {}]   ;;  %s535_s3 = inlined_call_operand.hbm [shape: f32[8,256], index: 3, kind: output, shape index: {}]  }
   0x1   :  { %9 = vsyncpa [#allocation9], 0 }
   0x2   :  { %10 = vsyncpa [#allocation7], 0  ;;  %s477_s12 = smov [#allocation8]  }
   0x3   :  { %s26_s13 = sshll.u32 %s477_s12, 4  ;;  %s27_s13 = int_to_ptr.vmem [resolvable:$true] %s26_s13 }
   0x4   :  { %s399_s14 = scalar_lea.vmem %s27_s13, 4096  ;;  %p404_p1 = scmp.lt.s32.totalorder %s27_s13, %s27_s13 }
   0x5   :  { %p400_p0 = scmp.ne.s32.totalorder %s27_s13, %s399_s14  ;;  %p405_p2 = scmp.lt.s32.totalorder %s399_s14, %s399_s14 }
   0x7   :  { %p406_p3 = por %p405_p2, %p404_p1 }
   0x9   :  { %p407_p4 = pnand %p406_p3, %p400_p0 }
   0xb   :  { %410 = shalt.err (!%p407_p4)
}
   0xc   :  { %s478_s15 = smov 256   ;;  %s479_s16 = smov 16  }
   0xd   :  { %32 = dma.hbm_to_vmem [thread:$0]  %s533_s1, 4096, %s27_s13, [#allocation9], %s478_s15, %s478_s15, %s479_s16  }
   0xe   :  { %s480_s19 = smov [#allocation5]   ;;  %s481_s21 = smov [#allocation10]  }
   0xf   :  { %s17_s20 = sshll.u32 %s480_s19, 4  ;;  %s38_s22 = sshll.u32 %s481_s21, 4  ;;  %s18_s20 = int_to_ptr.vmem [resolvable:$true] %s17_s20  ;;  %s39_s22 = int_to_ptr.vmem [resolvable:$true] %s38_s22 }
  0x10   :  { %s419_s23 = scalar_lea.vmem %s18_s20, 128  ;;  %p424_p6 = scmp.lt.s32.totalorder %s18_s20, %s18_s20 }
  0x11   :  { %p420_p5 = scmp.ne.s32.totalorder %s18_s20, %s419_s23  ;;  %p425_p7 = scmp.lt.s32.totalorder %s419_s23, %s419_s23 }
  0x13   :  { %p426_p8 = por %p425_p7, %p424_p6 }
  0x15   :  { %p427_p9 = pnand %p426_p8, %p420_p5 }
  0x17   :  { %430 = shalt.err (!%p427_p9)
}
  0x18   :  { %20 = dma.hbm_to_vmem [thread:$0]  %s532_s0, 128, %s18_s20, [#allocation6]  }
  0x19   :  { %s439_s26 = scalar_lea.vmem %s39_s22, 4096  ;;  %p444_p11 = scmp.lt.s32.totalorder %s39_s22, %s39_s22 }
  0x1a   :  { %p440_p10 = scmp.ne.s32.totalorder %s39_s22, %s439_s26  ;;  %p445_p12 = scmp.lt.s32.totalorder %s439_s26, %s439_s26 }
  0x1c   :  { %p446_p13 = por %p445_p12, %p444_p11 }
  0x1e   :  { %p447_p0 = pnand %p446_p13, %p440_p10 }
  0x20   :  { %450 = shalt.err (!%p447_p0)
}
  0x21   :  { %s482_s1 = smov 128   ;;  %s483_s27 = smov 8  }
  0x22   :  { %44 = dma.hbm_to_vmem [thread:$0]  %s534_s2, 4096, %s39_s22, [#allocation9], %s482_s1, %s482_s1, %s483_s27  }
  0x23   :  { %471 = dma.done.wait [#allocation6], 128  }
  0x24   :  { %472 = vsyncadd [#allocation6], 4294967168 }
  0x25   :  { %473 = dma.done.wait [#allocation9], 8192  }
  0x26   :  { %474 = vsyncadd [#allocation9], 4294959104  ;;  %vm58_vm0 = vcmask 7168   ;;  %v484_v0 = vmov -inf   ;;  %v485_v1 = vmov 0.0   ;;  %v94_v2 = vld [vmem:[#allocation8 + $0xf8] sm:$0xff] }
  0x27   :  { %59 = vst.msk [vmem:[#allocation2] sm:$0xff] %vm58_vm0, %v484_v0  ;;  %60 = vst.msk [vmem:[#allocation3] sm:$0xff] %vm58_vm0, %v485_v1  ;;  %159 = vmatprep.mubr.f32.mxu0 %v485_v1  ;;  %v93_v3 = vld [vmem:[#allocation8 + $0xf0] sm:$0xff]  ;;  %v92_v4 = vld [vmem:[#allocation8 + $0xe8] sm:$0xff]  ;;  %95 = vmatprep.subr.mxu0 %v94_v2  ;;  %v486_v38 = vmov 0   ;;  %s487_s0 = smov [#allocation11]  }
  0x28   :  { %v91_v5 = vld [vmem:[#allocation8 + $0xe0] sm:$0xff]  ;;  %96 = vmatpush1.msra.mxu0 %v93_v3  ;;  %v90_v6 = vld [vmem:[#allocation8 + $0xd8] sm:$0xff]  ;;  %v89_v7 = vld [vmem:[#allocation8 + $0xd0] sm:$0xff]  ;;  %381 = vset.pattern.permute.xlu0 %v486_v38  ;;  %s325_s2 = sshll.u32 %s487_s0, 4  ;;  %s326_s2 = int_to_ptr.vmem [resolvable:$true] %s325_s2 }
  0x29   :  { %97 = vmatprep.subr.mxu0 %v92_v4  ;;  %v88_v8 = vld [vmem:[#allocation8 + $0xc8] sm:$0xff]  ;;  %v87_v9 = vld [vmem:[#allocation8 + $0xc0] sm:$0xff]  ;;  %v86_v10 = vld [vmem:[#allocation8 + $0xb8] sm:$0xff]  ;;  %382 = vset.pattern.permute.xlu1 %v486_v38  ;;  %s451_s30 = scalar_lea.vmem %s326_s2, 256  ;;  %p456_p2 = scmp.lt.s32.totalorder %s326_s2, %s326_s2 }
  0x2a   :  { %98 = vmatpush1.msra.mxu0 %v91_v5  ;;  %v85_v11 = vld [vmem:[#allocation8 + $0xb0] sm:$0xff]  ;;  %v84_v12 = vld [vmem:[#allocation8 + $0xa8] sm:$0xff]  ;;  %v83_v13 = vld [vmem:[#allocation8 + $0xa0] sm:$0xff]  ;;  %p452_p1 = scmp.ne.s32.totalorder %s326_s2, %s451_s30  ;;  %p457_p3 = scmp.lt.s32.totalorder %s451_s30, %s451_s30 }
  0x2b   :  { %99 = vmatprep.subr.mxu0 %v90_v6  ;;  %v82_v14 = vld [vmem:[#allocation8 + $0x98] sm:$0xff]  ;;  %v81_v16 = vld [vmem:[#allocation8 + $0x90] sm:$0xff]  ;;  %v80_v17 = vld [vmem:[#allocation8 + $0x88] sm:$0xff] }
  0x2c   :  { %100 = vmatpush1.msra.mxu0 %v89_v7  ;;  %v62_v15 = vld [vmem:[#allocation5] sm:$0xff]  ;;  %v79_v18 = vld [vmem:[#allocation8 + $0x80] sm:$0xff]  ;;  %v77_v20 = vld [vmem:[#allocation8 + $0x70] sm:$0xff]  ;;  %p458_p4 = por %p457_p3, %p456_p2 }
  0x2d   :  { %101 = vmatprep.subr.mxu0 %v88_v8  ;;  %317 = vst [vmem:[#allocation11] sm:$0xff] %v62_v15  ;;  %v78_v19 = vld [vmem:[#allocation8 + $0x78] sm:$0xff]  ;;  %v76_v21 = vld [vmem:[#allocation8 + $0x68] sm:$0xff]  ;;  %v75_v22 = vld [vmem:[#allocation8 + $0x60] sm:$0xff] }
  0x2e   :  { %102 = vmatpush1.msra.mxu0 %v87_v9  ;;  %v74_v23 = vld [vmem:[#allocation8 + $0x58] sm:$0xff]  ;;  %v73_v24 = vld [vmem:[#allocation8 + $0x50] sm:$0xff]  ;;  %v72_v25 = vld [vmem:[#allocation8 + $0x48] sm:$0xff]  ;;  %p459_p5 = pnand %p458_p4, %p452_p1 }
  0x2f   :  { %103 = vmatprep.subr.mxu0 %v86_v10  ;;  %v71_v26 = vld [vmem:[#allocation8 + $0x40] sm:$0xff]  ;;  %v70_v27 = vld [vmem:[#allocation8 + $0x38] sm:$0xff]  ;;  %v69_v28 = vld [vmem:[#allocation8 + $0x30] sm:$0xff] }
  0x30   :  { %104 = vmatpush1.msra.mxu0 %v85_v11  ;;  %v68_v29 = vld [vmem:[#allocation8 + $0x28] sm:$0xff]  ;;  %v67_v30 = vld [vmem:[#allocation8 + $0x20] sm:$0xff]  ;;  %v66_v31 = vld [vmem:[#allocation8 + $0x18] sm:$0xff] }
  0x31   :  { %105 = vmatprep.subr.mxu0 %v84_v12  ;;  %v65_v32 = vld [vmem:[#allocation8 + $0x10] sm:$0xff]  ;;  %v64_v33 = vld [vmem:[#allocation8 + $0x8] sm:$0xff]  ;;  %v63_v34 = vld [vmem:[#allocation8] sm:$0xff] }
  0x32   :  { %106 = vmatpush1.msra.mxu0 %v83_v13  ;;  %v231_v39 = vld [vmem:[#allocation10 + $0xf8] sm:$0xff]  ;;  %v230_v41 = vld [vmem:[#allocation10 + $0xf0] sm:$0xff]  ;;  %v229_v43 = vld [vmem:[#allocation10 + $0xe8] sm:$0xff] }
  0x33   :  { %107 = vmatprep.subr.mxu0 %v82_v14  ;;  %v215_v40 = vld [vmem:[#allocation10 + $0x78] sm:$0xff]  ;;  %335 = vmatprep.subr.mxu1 %v231_v39  ;;  %v214_v42 = vld [vmem:[#allocation10 + $0x70] sm:$0xff]  ;;  %v213_v44 = vld [vmem:[#allocation10 + $0x68] sm:$0xff] }
  0x34   :  { %108 = vmatpush1.msra.mxu0 %v81_v16  ;;  %336 = vmatpush3.msra.mxu1 %v215_v40  ;;  %v228_v45 = vld [vmem:[#allocation10 + $0xe0] sm:$0xff]  ;;  %v227_v47 = vld [vmem:[#allocation10 + $0xd8] sm:$0xff]  ;;  %v226_v49 = vld [vmem:[#allocation10 + $0xd0] sm:$0xff] }
  0x35   :  { %109 = vmatprep.subr.mxu0 %v80_v17  ;;  %337 = vmatprep.subr.mxu1 %v230_v41  ;;  %v212_v46 = vld [vmem:[#allocation10 + $0x60] sm:$0xff]  ;;  %v211_v48 = vld [vmem:[#allocation10 + $0x58] sm:$0xff]  ;;  %v210_v50 = vld [vmem:[#allocation10 + $0x50] sm:$0xff] }
  0x36   :  { %110 = vmatpush1.msra.mxu0 %v79_v18  ;;  %338 = vmatpush3.msra.mxu1 %v214_v42  ;;  %v225_v51 = vld [vmem:[#allocation10 + $0xc8] sm:$0xff]  ;;  %v224_v55 = vld [vmem:[#allocation10 + $0xc0] sm:$0xff]  ;;  %v223_v58 = vld [vmem:[#allocation10 + $0xb8] sm:$0xff] }
  0x37   :  { %111 = vmatprep.subr.mxu0 %v78_v19  ;;  %339 = vmatprep.subr.mxu1 %v229_v43  ;;  %v166_v52 = vld [vmem:[#allocation2] sm:$0xff]  ;;  %v208_v57 = vld [vmem:[#allocation10 + $0x40] sm:$0xff]  ;;  %v207_v60 = vld [vmem:[#allocation10 + $0x38] sm:$0xff] }
  0x38   :  { %112 = vmatpush1.msra.mxu0 %v77_v20  ;;  %340 = vmatpush3.msra.mxu1 %v213_v44  ;;  %v209_v53 = vld [vmem:[#allocation10 + $0x48] sm:$0xff]  ;;  %v222_v61 = vld [vmem:[#allocation10 + $0xb0] sm:$0xff]  ;;  %v220_v1 = vld [vmem:[#allocation10 + $0xa0] sm:$0xff] }
  0x39   :  { %113 = vmatprep.subr.mxu0 %v76_v21  ;;  %341 = vmatprep.subr.mxu1 %v228_v45  ;;  %v206_v62 = vld [vmem:[#allocation10 + $0x30] sm:$0xff]  ;;  %v221_v63 = vld [vmem:[#allocation10 + $0xa8] sm:$0xff]  ;;  %v204_v2 = vld [vmem:[#allocation10 + $0x20] sm:$0xff] }
  0x3a   :  { %114 = vmatpush1.msra.mxu0 %v75_v22  ;;  %342 = vmatpush3.msra.mxu1 %v212_v46  ;;  %v205_v0 = vld [vmem:[#allocation10 + $0x28] sm:$0xff]  ;;  %v219_v3 = vld [vmem:[#allocation10 + $0x98] sm:$0xff]  ;;  %v218_v5 = vld [vmem:[#allocation10 + $0x90] sm:$0xff] }
  0x3b   :  { %115 = vmatprep.subr.mxu0 %v74_v23  ;;  %343 = vmatprep.subr.mxu1 %v227_v47  ;;  %v203_v4 = vld [vmem:[#allocation10 + $0x18] sm:$0xff]  ;;  %v202_v6 = vld [vmem:[#allocation10 + $0x10] sm:$0xff]  ;;  %v217_v7 = vld [vmem:[#allocation10 + $0x88] sm:$0xff] }
  0x3c   :  { %116 = vmatpush1.msra.mxu0 %v73_v24  ;;  %344 = vmatpush3.msra.mxu1 %v211_v48  ;;  %v201_v8 = vld [vmem:[#allocation10 + $0x8] sm:$0xff]  ;;  %v216_v9 = vld [vmem:[#allocation10 + $0x80] sm:$0xff]  ;;  %v185_v21 = vld [vmem:[#allocation3] sm:$0xff] }
  0x3d   :  { %117 = vmatprep.subr.mxu0 %v72_v25  ;;  %345 = vmatprep.subr.mxu1 %v226_v49  ;;  %v200_v10 = vld [vmem:[#allocation10] sm:$0xff] }
  0x3e   :  { %118 = vmatpush1.msra.mxu0 %v71_v26  ;;  %346 = vmatpush3.msra.mxu1 %v210_v50 }
  0x3f   :  { %119 = vmatprep.subr.mxu0 %v70_v27  ;;  %347 = vmatprep.subr.mxu1 %v225_v51 }
  0x40   :  { %120 = vmatpush1.msra.mxu0 %v69_v28  ;;  %348 = vmatpush3.msra.mxu1 %v209_v53 }
  0x41   :  { %121 = vmatprep.subr.mxu0 %v68_v29  ;;  %349 = vmatprep.subr.mxu1 %v224_v55 }
  0x42   :  { %122 = vmatpush1.msra.mxu0 %v67_v30  ;;  %350 = vmatpush3.msra.mxu1 %v208_v57 }
  0x43   :  { %123 = vmatprep.subr.mxu0 %v66_v31  ;;  %351 = vmatprep.subr.mxu1 %v223_v58 }
  0x44   :  { %124 = vmatpush1.msra.mxu0 %v65_v32  ;;  %352 = vmatpush3.msra.mxu1 %v207_v60 }
  0x45   :  { %125 = vmatprep.subr.mxu0 %v64_v33  ;;  %353 = vmatprep.subr.mxu1 %v222_v61 }
  0x46   :  { %126 = vmatpush1.msra.mxu0 %v63_v34  ;;  %354 = vmatpush3.msra.mxu1 %v206_v62 }
  0x47   :  { %160 = vmatmul.mubr.f32.vlgmr.msra.gmra.mxu0 %v62_v15  ;;  %355 = vmatprep.subr.mxu1 %v221_v63 }
  0x48   :  { %356 = vmatpush3.msra.mxu1 %v205_v0 }
  0x49   :  { %357 = vmatprep.subr.mxu1 %v220_v1 }
  0x4a   :  { %358 = vmatpush3.msra.mxu1 %v204_v2 }
  0x4b   :  { %359 = vmatprep.subr.mxu1 %v219_v3 }
  0x4c   :  { %360 = vmatpush3.msra.mxu1 %v203_v4 }
  0x4d   :  { %361 = vmatprep.subr.mxu1 %v218_v5 }
  0x4e   :  { %362 = vmatpush3.msra.mxu1 %v202_v6 }
  0x4f   :  { %363 = vmatprep.subr.mxu1 %v217_v7 }
  0x50   :  { %364 = vmatpush3.msra.mxu1 %v201_v8 }
  0x51   :  { %365 = vmatprep.subr.mxu1 %v216_v9 }
  0x52   :  { %366 = vmatpush3.msra.mxu1 %v200_v10 }
 0x107   :  { %v519_v35 = vpop.f32.mrf.mxu0 }
 0x109   :  { %v521_v36 = vpop.f32.mrf.mxu0 }
 0x10a   :  { %v167_v37 = vmax.f32 %v519_v35, %v521_v36 }
 0x10c   :  { %168 = vmax.xlane.f32.xlu0 %v167_v37 }
 0x195   :  { %v169_v54 = vpop.xlane.xlu0 %168 }
 0x196   :  { %v170_v56 = vmax.f32 %v166_v52, %v169_v54 }
 0x198   :  { %v171_v59 = vsub.f32 %v166_v52, %v170_v56  ;;  %304 = vst.msk [vmem:[#allocation2] sm:$0xff] %vm58_vm0, %v170_v56  ;;  %176 = vperm.xlu0 %381, %v170_v56  }
 0x19a   :  { %v172_v19 = vmul.f32 1.442695, %v171_v59 }
 0x213   :  { %v177_v11 = vpop.permute.xlu0 %176 }
 0x214   :  { %v179_v12 = vsub.f32 %v519_v35, %v177_v11  ;;  %v180_v13 = vsub.f32 %v521_v36, %v177_v11 }
 0x216   :  { %v181_v14 = vmul.f32 1.442695, %v179_v12  ;;  %v183_v15 = vmul.f32 1.442695, %v180_v13 }
 0x218   :  { %383 = vpow2.f32 %v181_v14 }
 0x219   :  { %385 = vpow2.f32 %v183_v15 }
 0x21a   :  { %387 = vpow2.f32 %v172_v19 }
 0x225   :  { %v384_v16 = vpop.eup %383 }
 0x226   :  { %v386_v17 = vpop.eup %385 }
 0x227   :  { %296 = vmatprep.mubr.f32.mxu1 %v386_v17  ;;  %v187_v18 = vadd.f32 %v386_v17, %v384_v16  ;;  %v388_v20 = vpop.eup %387 }
 0x228   :  { %297 = vmatmul.mubr.f32.vlgmr.msra.gmra.mxu1 %v384_v16  ;;  %v186_v22 = vmul.f32 %v388_v20, %v185_v21 }
 0x229   :  { %188 = vadd.xlane.f32.xlu1 %v187_v18 }
 0x23a   :  { %196 = vperm.xlu1 %382, %v388_v20  }
 0x2b2   :  { %v189_v23 = vpop.xlane.xlu1 %188 }
 0x2b3   :  { %v190_v24 = vadd.f32 %v189_v23, %v186_v22 }
 0x2b5   :  { %192 = vst.msk [vmem:[#allocation3] sm:$0xff] %vm58_vm0, %v190_v24 }
 0x2b6   :  { %v197_v29 = vpop.permute.xlu1 %196 }
 0x2b7   :  { %v199_v31 = vmul.f32 0.0, %v197_v29 }
 0x2bc   :  { %v308_v25 = vld [vmem:[#allocation3] sm:$0xff] }
 0x2bd   :  { %389 = vrcp.f32 %v308_v25 }
 0x2ca   :  { %v390_v26 = vpop.eup %389 }
 0x2cb   :  { %313 = vperm.xlu1 %382, %v390_v26  }
 0x2e8   :  { %v367_v27 = vpop.f32.mrf.mxu1 }
 0x2ea   :  { %v368_v28 = vpop.f32.mrf.mxu1 }
 0x2eb   :  { %v369_v30 = vadd.f32 %v368_v28, %v367_v27 }
 0x2ed   :  { %v302_v32 = vadd.f32 %v369_v30, %v199_v31 }
 0x346   :  { %v314_v33 = vpop.permute.xlu1 %313 }
 0x347   :  { %v316_v34 = vmul.f32 %v314_v33, %v302_v32 }
 0x349   :  { %318 = vst [vmem:[#allocation11 + $0x8] sm:$0xff] %v316_v34 }
 0x34a   :  { %462 = shalt.err (!%p459_p5)
}
 0x34b   :  { %328 = dma.vmem_to_hbm [thread:$0]  %s326_s2, 256, %s535_s3, [#allocation7]  }
 0x34c   :  { %475 = dma.done.wait [#allocation7], 256  }
 0x34d   :  { %476 = vsyncadd [#allocation7], 4294967040 }
 0x34e   :  { %332 = vsyncpa [#allocation6], 1 }
 0x34f   :  { %333 = vsyncpa [#allocation9], 1 }
 0x350   :  { %334 = vsyncpa [#allocation7], 1 }

// kernel: tpu_custom_call.1
= control target key start
LH: loop header
LB: loop body
LE: loop exit
PB: predicated region body
PF: predicated region fallthrough
CT: control target
= control target key end

     0   :  { %8 = vsyncpa [#allocation6], 0  ;;  %s532_s0 = inlined_call_operand.hbm [shape: f32[8,128], index: 0, kind: input, shape index: {}]   ;;  %s533_s1 = inlined_call_operand.hbm [shape: f32[128,256], index: 1, kind: input, shape index: {}]   ;;  %s534_s2 = inlined_call_operand.hbm [shape: f32[256,128], index: 2, kind: input, shape index: {}]   ;;  %s535_s3 = inlined_call_operand.hbm [shape: f32[8,256], index: 3, kind: output, shape index: {}]  }
   0x1   :  { %9 = vsyncpa [#allocation9], 0 }
   0x2   :  { %10 = vsyncpa [#allocation7], 0  ;;  %s477_s12 = smov [#allocation8]  }
   0x3   :  { %s26_s13 = sshll.u32 %s477_s12, 4  ;;  %s27_s13 = int_to_ptr.vmem [resolvable:$true] %s26_s13 }
   0x4   :  { %s399_s14 = scalar_lea.vmem %s27_s13, 4096  ;;  %p404_p1 = scmp.lt.s32.totalorder %s27_s13, %s27_s13 }
   0x5   :  { %p400_p0 = scmp.ne.s32.totalorder %s27_s13, %s399_s14  ;;  %p405_p2 = scmp.lt.s32.totalorder %s399_s14, %s399_s14 }
   0x7   :  { %p406_p3 = por %p405_p2, %p404_p1 }
   0x9   :  { %p407_p4 = pnand %p406_p3, %p400_p0 }
   0xb   :  { %410 = shalt.err (!%p407_p4)
}
   0xc   :  { %s478_s15 = smov 256   ;;  %s479_s16 = smov 16  }
   0xd   :  { %32 = dma.hbm_to_vmem [thread:$0]  %s533_s1, 4096, %s27_s13, [#allocation9], %s478_s15, %s478_s15, %s479_s16  }
   0xe   :  { %s480_s19 = smov [#allocation5]   ;;  %s481_s21 = smov [#allocation10]  }
   0xf   :  { %s17_s20 = sshll.u32 %s480_s19, 4  ;;  %s38_s22 = sshll.u32 %s481_s21, 4  ;;  %s18_s20 = int_to_ptr.vmem [resolvable:$true] %s17_s20  ;;  %s39_s22 = int_to_ptr.vmem [resolvable:$true] %s38_s22 }
  0x10   :  { %s419_s23 = scalar_lea.vmem %s18_s20, 128  ;;  %p424_p6 = scmp.lt.s32.totalorder %s18_s20, %s18_s20 }
  0x11   :  { %p420_p5 = scmp.ne.s32.totalorder %s18_s20, %s419_s23  ;;  %p425_p7 = scmp.lt.s32.totalorder %s419_s23, %s419_s23 }
  0x13   :  { %p426_p8 = por %p425_p7, %p424_p6 }
  0x15   :  { %p427_p9 = pnand %p426_p8, %p420_p5 }
  0x17   :  { %430 = shalt.err (!%p427_p9)
}
  0x18   :  { %20 = dma.hbm_to_vmem [thread:$0]  %s532_s0, 128, %s18_s20, [#allocation6]  }
  0x19   :  { %s439_s26 = scalar_lea.vmem %s39_s22, 4096  ;;  %p444_p11 = scmp.lt.s32.totalorder %s39_s22, %s39_s22 }
  0x1a   :  { %p440_p10 = scmp.ne.s32.totalorder %s39_s22, %s439_s26  ;;  %p445_p12 = scmp.lt.s32.totalorder %s439_s26, %s439_s26 }
  0x1c   :  { %p446_p13 = por %p445_p12, %p444_p11 }
  0x1e   :  { %p447_p0 = pnand %p446_p13, %p440_p10 }
  0x20   :  { %450 = shalt.err (!%p447_p0)
}
  0x21   :  { %s482_s1 = smov 128   ;;  %s483_s27 = smov 8  }
  0x22   :  { %44 = dma.hbm_to_vmem [thread:$0]  %s534_s2, 4096, %s39_s22, [#allocation9], %s482_s1, %s482_s1, %s483_s27  }
  0x23   :  { %471 = dma.done.wait [#allocation6], 128  }
  0x24   :  { %472 = vsyncadd [#allocation6], 4294967168 }
  0x25   :  { %473 = dma.done.wait [#allocation9], 8192  }
  0x26   :  { %474 = vsyncadd [#allocation9], 4294959104  ;;  %vm58_vm0 = vcmask 7168   ;;  %v484_v0 = vmov -inf   ;;  %v485_v1 = vmov 0.0   ;;  %v94_v2 = vld [vmem:[#allocation8 + $0xf8] sm:$0xff] }
  0x27   :  { %59 = vst.msk [vmem:[#allocation2] sm:$0xff] %vm58_vm0, %v484_v0  ;;  %60 = vst.msk [vmem:[#allocation3] sm:$0xff] %vm58_vm0, %v485_v1  ;;  %159 = vmatprep.mubr.f32.mxu0 %v485_v1  ;;  %v93_v3 = vld [vmem:[#allocation8 + $0xf0] sm:$0xff]  ;;  %v92_v4 = vld [vmem:[#allocation8 + $0xe8] sm:$0xff]  ;;  %95 = vmatprep.subr.mxu0 %v94_v2  ;;  %v486_v38 = vmov 0   ;;  %s487_s0 = smov [#allocation11]  }
  0x28   :  { %v91_v5 = vld [vmem:[#allocation8 + $0xe0] sm:$0xff]  ;;  %96 = vmatpush1.msra.mxu0 %v93_v3  ;;  %v90_v6 = vld [vmem:[#allocation8 + $0xd8] sm:$0xff]  ;;  %v89_v7 = vld [vmem:[#allocation8 + $0xd0] sm:$0xff]  ;;  %381 = vset.pattern.permute.xlu0 %v486_v38  ;;  %s325_s2 = sshll.u32 %s487_s0, 4  ;;  %s326_s2 = int_to_ptr.vmem [resolvable:$true] %s325_s2 }
  0x29   :  { %97 = vmatprep.subr.mxu0 %v92_v4  ;;  %v88_v8 = vld [vmem:[#allocation8 + $0xc8] sm:$0xff]  ;;  %v87_v9 = vld [vmem:[#allocation8 + $0xc0] sm:$0xff]  ;;  %v86_v10 = vld [vmem:[#allocation8 + $0xb8] sm:$0xff]  ;;  %382 = vset.pattern.permute.xlu1 %v486_v38  ;;  %s451_s30 = scalar_lea.vmem %s326_s2, 256  ;;  %p456_p2 = scmp.lt.s32.totalorder %s326_s2, %s326_s2 }
  0x2a   :  { %98 = vmatpush1.msra.mxu0 %v91_v5  ;;  %v85_v11 = vld [vmem:[#allocation8 + $0xb0] sm:$0xff]  ;;  %v84_v12 = vld [vmem:[#allocation8 + $0xa8] sm:$0xff]  ;;  %v83_v13 = vld [vmem:[#allocation8 + $0xa0] sm:$0xff]  ;;  %p452_p1 = scmp.ne.s32.totalorder %s326_s2, %s451_s30  ;;  %p457_p3 = scmp.lt.s32.totalorder %s451_s30, %s451_s30 }
  0x2b   :  { %99 = vmatprep.subr.mxu0 %v90_v6  ;;  %v82_v14 = vld [vmem:[#allocation8 + $0x98] sm:$0xff]  ;;  %v81_v16 = vld [vmem:[#allocation8 + $0x90] sm:$0xff]  ;;  %v80_v17 = vld [vmem:[#allocation8 + $0x88] sm:$0xff] }
  0x2c   :  { %100 = vmatpush1.msra.mxu0 %v89_v7  ;;  %v62_v15 = vld [vmem:[#allocation5] sm:$0xff]  ;;  %v79_v18 = vld [vmem:[#allocation8 + $0x80] sm:$0xff]  ;;  %v77_v20 = vld [vmem:[#allocation8 + $0x70] sm:$0xff]  ;;  %p458_p4 = por %p457_p3, %p456_p2 }
  0x2d   :  { %101 = vmatprep.subr.mxu0 %v88_v8  ;;  %317 = vst [vmem:[#allocation11] sm:$0xff] %v62_v15  ;;  %v78_v19 = vld [vmem:[#allocation8 + $0x78] sm:$0xff]  ;;  %v76_v21 = vld [vmem:[#allocation8 + $0x68] sm:$0xff]  ;;  %v75_v22 = vld [vmem:[#allocation8 + $0x60] sm:$0xff] }
  0x2e   :  { %102 = vmatpush1.msra.mxu0 %v87_v9  ;;  %v74_v23 = vld [vmem:[#allocation8 + $0x58] sm:$0xff]  ;;  %v73_v24 = vld [vmem:[#allocation8 + $0x50] sm:$0xff]  ;;  %v72_v25 = vld [vmem:[#allocation8 + $0x48] sm:$0xff]  ;;  %p459_p5 = pnand %p458_p4, %p452_p1 }
  0x2f   :  { %103 = vmatprep.subr.mxu0 %v86_v10  ;;  %v71_v26 = vld [vmem:[#allocation8 + $0x40] sm:$0xff]  ;;  %v70_v27 = vld [vmem:[#allocation8 + $0x38] sm:$0xff]  ;;  %v69_v28 = vld [vmem:[#allocation8 + $0x30] sm:$0xff] }
  0x30   :  { %104 = vmatpush1.msra.mxu0 %v85_v11  ;;  %v68_v29 = vld [vmem:[#allocation8 + $0x28] sm:$0xff]  ;;  %v67_v30 = vld [vmem:[#allocation8 + $0x20] sm:$0xff]  ;;  %v66_v31 = vld [vmem:[#allocation8 + $0x18] sm:$0xff] }
  0x31   :  { %105 = vmatprep.subr.mxu0 %v84_v12  ;;  %v65_v32 = vld [vmem:[#allocation8 + $0x10] sm:$0xff]  ;;  %v64_v33 = vld [vmem:[#allocation8 + $0x8] sm:$0xff]  ;;  %v63_v34 = vld [vmem:[#allocation8] sm:$0xff] }
  0x32   :  { %106 = vmatpush1.msra.mxu0 %v83_v13  ;;  %v231_v39 = vld [vmem:[#allocation10 + $0xf8] sm:$0xff]  ;;  %v230_v41 = vld [vmem:[#allocation10 + $0xf0] sm:$0xff]  ;;  %v229_v43 = vld [vmem:[#allocation10 + $0xe8] sm:$0xff] }
  0x33   :  { %107 = vmatprep.subr.mxu0 %v82_v14  ;;  %v215_v40 = vld [vmem:[#allocation10 + $0x78] sm:$0xff]  ;;  %335 = vmatprep.subr.mxu1 %v231_v39  ;;  %v214_v42 = vld [vmem:[#allocation10 + $0x70] sm:$0xff]  ;;  %v213_v44 = vld [vmem:[#allocation10 + $0x68] sm:$0xff] }
  0x34   :  { %108 = vmatpush1.msra.mxu0 %v81_v16  ;;  %336 = vmatpush3.msra.mxu1 %v215_v40  ;;  %v228_v45 = vld [vmem:[#allocation10 + $0xe0] sm:$0xff]  ;;  %v227_v47 = vld [vmem:[#allocation10 + $0xd8] sm:$0xff]  ;;  %v226_v49 = vld [vmem:[#allocation10 + $0xd0] sm:$0xff] }
  0x35   :  { %109 = vmatprep.subr.mxu0 %v80_v17  ;;  %337 = vmatprep.subr.mxu1 %v230_v41  ;;  %v212_v46 = vld [vmem:[#allocation10 + $0x60] sm:$0xff]  ;;  %v211_v48 = vld [vmem:[#allocation10 + $0x58] sm:$0xff]  ;;  %v210_v50 = vld [vmem:[#allocation10 + $0x50] sm:$0xff] }
  0x36   :  { %110 = vmatpush1.msra.mxu0 %v79_v18  ;;  %338 = vmatpush3.msra.mxu1 %v214_v42  ;;  %v225_v51 = vld [vmem:[#allocation10 + $0xc8] sm:$0xff]  ;;  %v224_v55 = vld [vmem:[#allocation10 + $0xc0] sm:$0xff]  ;;  %v223_v58 = vld [vmem:[#allocation10 + $0xb8] sm:$0xff] }
  0x37   :  { %111 = vmatprep.subr.mxu0 %v78_v19  ;;  %339 = vmatprep.subr.mxu1 %v229_v43  ;;  %v166_v52 = vld [vmem:[#allocation2] sm:$0xff]  ;;  %v208_v57 = vld [vmem:[#allocation10 + $0x40] sm:$0xff]  ;;  %v207_v60 = vld [vmem:[#allocation10 + $0x38] sm:$0xff] }
  0x38   :  { %112 = vmatpush1.msra.mxu0 %v77_v20  ;;  %340 = vmatpush3.msra.mxu1 %v213_v44  ;;  %v209_v53 = vld [vmem:[#allocation10 + $0x48] sm:$0xff]  ;;  %v222_v61 = vld [vmem:[#allocation10 + $0xb0] sm:$0xff]  ;;  %v220_v1 = vld [vmem:[#allocation10 + $0xa0] sm:$0xff] }
  0x39   :  { %113 = vmatprep.subr.mxu0 %v76_v21  ;;  %341 = vmatprep.subr.mxu1 %v228_v45  ;;  %v206_v62 = vld [vmem:[#allocation10 + $0x30] sm:$0xff]  ;;  %v221_v63 = vld [vmem:[#allocation10 + $0xa8] sm:$0xff]  ;;  %v204_v2 = vld [vmem:[#allocation10 + $0x20] sm:$0xff] }
  0x3a   :  { %114 = vmatpush1.msra.mxu0 %v75_v22  ;;  %342 = vmatpush3.msra.mxu1 %v212_v46  ;;  %v205_v0 = vld [vmem:[#allocation10 + $0x28] sm:$0xff]  ;;  %v219_v3 = vld [vmem:[#allocation10 + $0x98] sm:$0xff]  ;;  %v218_v5 = vld [vmem:[#allocation10 + $0x90] sm:$0xff] }
  0x3b   :  { %115 = vmatprep.subr.mxu0 %v74_v23  ;;  %343 = vmatprep.subr.mxu1 %v227_v47  ;;  %v203_v4 = vld [vmem:[#allocation10 + $0x18] sm:$0xff]  ;;  %v202_v6 = vld [vmem:[#allocation10 + $0x10] sm:$0xff]  ;;  %v217_v7 = vld [vmem:[#allocation10 + $0x88] sm:$0xff] }
  0x3c   :  { %116 = vmatpush1.msra.mxu0 %v73_v24  ;;  %344 = vmatpush3.msra.mxu1 %v211_v48  ;;  %v201_v8 = vld [vmem:[#allocation10 + $0x8] sm:$0xff]  ;;  %v216_v9 = vld [vmem:[#allocation10 + $0x80] sm:$0xff]  ;;  %v185_v21 = vld [vmem:[#allocation3] sm:$0xff] }
  0x3d   :  { %117 = vmatprep.subr.mxu0 %v72_v25  ;;  %345 = vmatprep.subr.mxu1 %v226_v49  ;;  %v200_v10 = vld [vmem:[#allocation10] sm:$0xff] }
  0x3e   :  { %118 = vmatpush1.msra.mxu0 %v71_v26  ;;  %346 = vmatpush3.msra.mxu1 %v210_v50 }
  0x3f   :  { %119 = vmatprep.subr.mxu0 %v70_v27  ;;  %347 = vmatprep.subr.mxu1 %v225_v51 }
  0x40   :  { %120 = vmatpush1.msra.mxu0 %v69_v28  ;;  %348 = vmatpush3.msra.mxu1 %v209_v53 }
  0x41   :  { %121 = vmatprep.subr.mxu0 %v68_v29  ;;  %349 = vmatprep.subr.mxu1 %v224_v55 }
  0x42   :  { %122 = vmatpush1.msra.mxu0 %v67_v30  ;;  %350 = vmatpush3.msra.mxu1 %v208_v57 }
  0x43   :  { %123 = vmatprep.subr.mxu0 %v66_v31  ;;  %351 = vmatprep.subr.mxu1 %v223_v58 }
  0x44   :  { %124 = vmatpush1.msra.mxu0 %v65_v32  ;;  %352 = vmatpush3.msra.mxu1 %v207_v60 }
  0x45   :  { %125 = vmatprep.subr.mxu0 %v64_v33  ;;  %353 = vmatprep.subr.mxu1 %v222_v61 }
  0x46   :  { %126 = vmatpush1.msra.mxu0 %v63_v34  ;;  %354 = vmatpush3.msra.mxu1 %v206_v62 }
  0x47   :  { %160 = vmatmul.mubr.f32.vlgmr.msra.gmra.mxu0 %v62_v15  ;;  %355 = vmatprep.subr.mxu1 %v221_v63 }
  0x48   :  { %356 = vmatpush3.msra.mxu1 %v205_v0 }
  0x49   :  { %357 = vmatprep.subr.mxu1 %v220_v1 }
  0x4a   :  { %358 = vmatpush3.msra.mxu1 %v204_v2 }
  0x4b   :  { %359 = vmatprep.subr.mxu1 %v219_v3 }
  0x4c   :  { %360 = vmatpush3.msra.mxu1 %v203_v4 }
  0x4d   :  { %361 = vmatprep.subr.mxu1 %v218_v5 }
  0x4e   :  { %362 = vmatpush3.msra.mxu1 %v202_v6 }
  0x4f   :  { %363 = vmatprep.subr.mxu1 %v217_v7 }
  0x50   :  { %364 = vmatpush3.msra.mxu1 %v201_v8 }
  0x51   :  { %365 = vmatprep.subr.mxu1 %v216_v9 }
  0x52   :  { %366 = vmatpush3.msra.mxu1 %v200_v10 }
 0x107   :  { %v519_v35 = vpop.f32.mrf.mxu0 }
 0x109   :  { %v521_v36 = vpop.f32.mrf.mxu0 }
 0x10a   :  { %v167_v37 = vmax.f32 %v519_v35, %v521_v36 }
 0x10c   :  { %168 = vmax.xlane.f32.xlu0 %v167_v37 }
 0x195   :  { %v169_v54 = vpop.xlane.xlu0 %168 }
 0x196   :  { %v170_v56 = vmax.f32 %v166_v52, %v169_v54 }
 0x198   :  { %v171_v59 = vsub.f32 %v166_v52, %v170_v56  ;;  %304 = vst.msk [vmem:[#allocation2] sm:$0xff] %vm58_vm0, %v170_v56  ;;  %176 = vperm.xlu0 %381, %v170_v56  }
 0x19a   :  { %v172_v19 = vmul.f32 1.442695, %v171_v59 }
 0x213   :  { %v177_v11 = vpop.permute.xlu0 %176 }
 0x214   :  { %v179_v12 = vsub.f32 %v519_v35, %v177_v11  ;;  %v180_v13 = vsub.f32 %v521_v36, %v177_v11 }
 0x216   :  { %v181_v14 = vmul.f32 1.442695, %v179_v12  ;;  %v183_v15 = vmul.f32 1.442695, %v180_v13 }
 0x218   :  { %383 = vpow2.f32 %v181_v14 }
 0x219   :  { %385 = vpow2.f32 %v183_v15 }
 0x21a   :  { %387 = vpow2.f32 %v172_v19 }
 0x225   :  { %v384_v16 = vpop.eup %383 }
 0x226   :  { %v386_v17 = vpop.eup %385 }
 0x227   :  { %296 = vmatprep.mubr.f32.mxu1 %v386_v17  ;;  %v187_v18 = vadd.f32 %v386_v17, %v384_v16  ;;  %v388_v20 = vpop.eup %387 }
 0x228   :  { %297 = vmatmul.mubr.f32.vlgmr.msra.gmra.mxu1 %v384_v16  ;;  %v186_v22 = vmul.f32 %v388_v20, %v185_v21 }
 0x229   :  { %188 = vadd.xlane.f32.xlu1 %v187_v18 }
 0x23a   :  { %196 = vperm.xlu1 %382, %v388_v20  }
 0x2b2   :  { %v189_v23 = vpop.xlane.xlu1 %188 }
 0x2b3   :  { %v190_v24 = vadd.f32 %v189_v23, %v186_v22 }
 0x2b5   :  { %192 = vst.msk [vmem:[#allocation3] sm:$0xff] %vm58_vm0, %v190_v24 }
 0x2b6   :  { %v197_v29 = vpop.permute.xlu1 %196 }
 0x2b7   :  { %v199_v31 = vmul.f32 0.0, %v197_v29 }
 0x2bc   :  { %v308_v25 = vld [vmem:[#allocation3] sm:$0xff] }
 0x2bd   :  { %389 = vrcp.f32 %v308_v25 }
 0x2ca   :  { %v390_v26 = vpop.eup %389 }
 0x2cb   :  { %313 = vperm.xlu1 %382, %v390_v26  }
 0x2e8   :  { %v367_v27 = vpop.f32.mrf.mxu1 }
 0x2ea   :  { %v368_v28 = vpop.f32.mrf.mxu1 }
 0x2eb   :  { %v369_v30 = vadd.f32 %v368_v28, %v367_v27 }
 0x2ed   :  { %v302_v32 = vadd.f32 %v369_v30, %v199_v31 }
 0x346   :  { %v314_v33 = vpop.permute.xlu1 %313 }
 0x347   :  { %v316_v34 = vmul.f32 %v314_v33, %v302_v32 }
 0x349   :  { %318 = vst [vmem:[#allocation11 + $0x8] sm:$0xff] %v316_v34 }
 0x34a   :  { %462 = shalt.err (!%p459_p5)
}
 0x34b   :  { %328 = dma.vmem_to_hbm [thread:$0]  %s326_s2, 256, %s535_s3, [#allocation7]  }
 0x34c   :  { %475 = dma.done.wait [#allocation7], 256  }
 0x34d   :  { %476 = vsyncadd [#allocation7], 4294967040 }
 0x34e   :  { %332 = vsyncpa [#allocation6], 1 }
 0x34f   :  { %333 = vsyncpa [#allocation9], 1 }
 0x350   :  { %334 = vsyncpa [#allocation7], 1 }

</bundles_post_ra>
